<compile_context>
chip_gen: v5e
topology: v5e:2x2
jax: 0.10.0
libtpu: 0.0.40
codegen_flags: <defaults>
</compile_context>

<pallas_src>
import jax
import jax.numpy as jnp
from jax.experimental import pallas as pl
from jax.experimental.pallas import tpu as pltpu


def _round_lanes(c, min_pad):
    """Pad a channel count up to a multiple of 128 lanes when c >= min_pad."""
    if c % 128 == 0:
        return c
    if c >= min_pad:
        return ((c + 127) // 128) * 128
    return c


def _vmem_limit_bytes():
    """Generation-aware VMEM limit: ~40 MiB on v7x (64 MiB/TC), ~80 MiB on
    v5e/v6e (128 MiB).  Conservative fallback if the query is unavailable."""
    cap = 64 << 20
    try:
        info = pltpu.get_tpu_info()
        c = getattr(info, "vmem_capacity_bytes", None)
        if c:
            cap = int(c)
    except Exception:
        pass
    return (cap * 5) // 8


def _pick_tile_h(H, W, N, cin_p, cout_p, out_bytes, budget_bytes, max_rows=256):
    """Largest row tile that divides H, keeps the flattened output block
    sublane-aligned, fits the VMEM budget, and (for N == 1) leaves >= 2 grid
    steps so both v7x TensorCores get work."""
    wp = W + 2
    per_row = (4 * wp * cin_p                 # double-buffered bf16 body rows
               + 6 * W * cin_p                # xcat slab rows (3*Cin wide, bf16)
               + 4 * W * cin_p                # slice/reshape relayout temporaries
               + 4 * W * cout_p               # f32 accumulator materialised by Mosaic
               + 2 * W * cout_p * out_bytes)  # double-buffered output rows
    fixed = (8 * wp * cin_p                   # 2 halo rows x 2 buffers, bf16
             + 12 * W * cin_p                 # xcat halo rows
             + 2 * (9 * cin_p * cout_p * 2 + cout_p * 4))  # weights + bias
    cap = max(1, min(max_rows, (budget_bytes - fixed) // max(per_row, 1)))

    def valid(d, allow_full_height):
        if H % d:
            return False
        if (d * W) % 8 and d != H:
            return False
        if d > cap:
            return False
        if not allow_full_height and N == 1 and d == H and H > 1:
            return False                      # keep >= 2 steps for v7x megacore
        return True

    cands = [d for d in range(1, H + 1) if valid(d, False)]
    if not cands:
        cands = [d for d in range(1, H + 1) if valid(d, True)]
    return max(cands) if cands else H


def _make_conv3x3_kernel(tile_h, W, cin_p):
    th = tile_h
    M = th * W

    def kernel(top_ref, body_ref, bot_ref, w_ref, b_ref, o_ref, xcat_ref):
        # Build the kw-folded LHS slab once per step:
        #   xcat[p*W + x, kw*Cin + ci] = xpad_tile[p, x + kw, ci]
        # where padded-tile row p=0 is the reflected top halo row, p in [1, th]
        # the body rows and p=th+1 the reflected bottom halo row.
        for kw in range(3):
            lo, hi = kw * cin_p, (kw + 1) * cin_p
            xcat_ref[0:W, lo:hi] = top_ref[0, 0, kw:kw + W, :]
            xcat_ref[W:(th + 1) * W, lo:hi] = (
                body_ref[0, :, kw:kw + W, :].reshape(th * W, -1))
            xcat_ref[(th + 1) * W:(th + 2) * W, lo:hi] = bot_ref[0, 0, kw:kw + W, :]

        # Three MXU matmuls with K = 3*Cin (one per kh); each LHS is an aligned
        # row-offset window of xcat (offsets 0, W, 2W).  f32 value-chain
        # accumulation (no scratch round trips); bias add + cast fused into the
        # single lane-dense store.
        acc = jnp.dot(xcat_ref[0:M, :], w_ref[0],
                      preferred_element_type=jnp.float32)
        acc = acc + jnp.dot(xcat_ref[W:W + M, :], w_ref[1],
                            preferred_element_type=jnp.float32)
        acc = acc + jnp.dot(xcat_ref[2 * W:2 * W + M, :], w_ref[2],
                            preferred_element_type=jnp.float32)
        o_ref[0] = (acc + b_ref[...]).astype(o_ref.dtype)

    return kernel


def _conv3x3_pallas(xw, w3, bias, H, W, tile_h, out_dtype):
    """xw: (N, H, W+2, cin_p) bf16 width-reflect-padded NHWC.
    w3: (3, 3*cin_p, cout_p) bf16 (kh-major; contraction index = kw*cin_p + ci).
    bias: (1, cout_p) f32.  Returns (N, H*W, cout_p) in out_dtype."""
    N, _, Wp, cin_p = xw.shape
    cout_p = w3.shape[-1]
    th = tile_h
    T = H // th

    # Halo index maps return element-granular row indices; this is valid ONLY
    # because the halo block height is 1 (block index == element row index).
    def top_map(n, t):                         # row  t*th - 1, reflected at the top
        return (n, jnp.abs(t * th - 1), 0, 0)

    def body_map(n, t):
        return (n, t, 0, 0)

    def bot_map(n, t):                         # row (t+1)*th, reflected at the bottom
        r = (t + 1) * th
        return (n, jnp.minimum(r, 2 * (H - 1) - r), 0, 0)

    out_bytes = jnp.dtype(out_dtype).itemsize
    flops = 2 * N * H * W * 9 * cin_p * cout_p
    bytes_accessed = (N * (H + 2 * T) * Wp * cin_p * 2     # bf16 input + halo rows
                      + N * H * W * cout_p * out_bytes     # output
                      + 9 * cin_p * cout_p * 2 + cout_p * 4)

    return pl.pallas_call(
        _make_conv3x3_kernel(th, W, cin_p),
        out_shape=jax.ShapeDtypeStruct((N, H * W, cout_p), out_dtype),
        grid=(N, T),
        in_specs=[
            pl.BlockSpec((1, 1, Wp, cin_p), top_map),        # top halo row
            pl.BlockSpec((1, th, Wp, cin_p), body_map),      # body rows
            pl.BlockSpec((1, 1, Wp, cin_p), bot_map),        # bottom halo row
            pl.BlockSpec((3, 3 * cin_p, cout_p), lambda n, t: (0, 0, 0)),
            pl.BlockSpec((1, cout_p), lambda n, t: (0, 0)),
        ],
        out_specs=pl.BlockSpec((1, th * W, cout_p), lambda n, t: (n, t, 0)),
        scratch_shapes=[
            pltpu.VMEM(((th + 2) * W, 3 * cin_p), jnp.bfloat16),  # kw-folded LHS slab
        ],
        compiler_params=pltpu.CompilerParams(
            dimension_semantics=("parallel", "parallel"),
            vmem_limit_bytes=_vmem_limit_bytes(),
        ),
        cost_estimate=pl.CostEstimate(
            flops=flops, transcendentals=0, bytes_accessed=bytes_accessed),
    )(xw, xw, xw, w3, bias)


def conv3x3_reflect_nhwc(x_nhwc, weight, bias=None, *, out_dtype=jnp.float32,
                         tile_h=None):
    """conv2d(reflection_pad_1(x)) for a 3x3 / stride-1 ConvLayer, NHWC in/out.
    Prefer this entry point across a trunk of layers so activations stay
    NHWC/bf16 and the NCHW<->NHWC relayouts are hoisted out of the hot path."""
    N, H, W, Cin = x_nhwc.shape
    Cout, Cw, KH, KW = weight.shape
    assert Cw == Cin and KH == 3 and KW == 3 and H >= 2 and W >= 2
    if bias is None:
        bias = jnp.zeros((Cout,), jnp.float32)

    # Input lane pad only from 64 channels (padding costs HBM read traffic);
    # output lane pad already from 16 channels (lane-dense vst is the big lever).
    cin_p = _round_lanes(Cin, 64)
    cout_p = _round_lanes(Cout, 16)

    # One fused copy: cast to bf16 + width reflect-pad (+ optional lane pad).
    x = x_nhwc.astype(jnp.bfloat16)
    x = jnp.pad(x, ((0, 0), (0, 0), (1, 1), (0, 0)), mode="reflect")
    if cin_p != Cin:
        x = jnp.pad(x, ((0, 0), (0, 0), (0, 0), (0, cin_p - Cin)))

    # Weights: (Cout, Cin, 3, 3) -> (kh, kw, Cin, Cout) -> (3, 3*cin_p, cout_p)
    # so the contraction index is kw*cin_p + ci, matching the xcat slab layout.
    w4 = jnp.transpose(weight, (2, 3, 1, 0)).astype(jnp.bfloat16)
    if (cin_p, cout_p) != (Cin, Cout):
        w4 = jnp.pad(w4, ((0, 0), (0, 0), (0, cin_p - Cin), (0, cout_p - Cout)))
    w3 = w4.reshape(3, 3 * cin_p, cout_p)

    b = bias.reshape(1, Cout).astype(jnp.float32)
    if cout_p != Cout:
        b = jnp.pad(b, ((0, 0), (0, cout_p - Cout)))

    out_bytes = jnp.dtype(out_dtype).itemsize
    if tile_h is None:
        tile_h = _pick_tile_h(H, W, N, cin_p, cout_p, out_bytes,
                              budget_bytes=_vmem_limit_bytes() // 2)
    if H % tile_h or ((tile_h * W) % 8 and tile_h != H):
        raise ValueError(f"invalid tile_h={tile_h} for H={H}, W={W}")

    y = _conv3x3_pallas(x, w3, b, H, W, tile_h, out_dtype)   # (N, H*W, cout_p)
    return y[:, :, :Cout].reshape(N, H, W, Cout)


def conv_layer(x_nchw, weight, bias=None, *, stride=1, out_dtype=jnp.float32,
               tile_h=None):
    """Intended fast-neural-style ConvLayer forward: conv2d(reflection_pad(x)).

    x_nchw: (N, Cin, H, W) float32 (PyTorch layout).
    weight: (Cout, Cin, 3, 3) PyTorch Conv2d weight.  bias: (Cout,) or None.
    Returns (N, Cout, H, W) in out_dtype (float32 by default).
    """
    Cout, Cin, KH, KW = weight.shape
    if KH != 3 or KW != 3 or stride != 1:
        # TODO(synk): kernel_size != 3 / stride != 1 (the 9x9 stem and the
        # stride-2 down-sampling ConvLayers) are not implemented in Pallas.
        raise NotImplementedError("Pallas ConvLayer supports kernel_size=3, stride=1.")
    N, Cx, H, W = x_nchw.shape
    assert Cx == Cin
    x = jnp.transpose(x_nchw, (0, 2, 3, 1))
    y = conv3x3_reflect_nhwc(x, weight, bias, out_dtype=out_dtype, tile_h=tile_h)
    return jnp.transpose(y, (0, 3, 1, 2))


if __name__ == "__main__":
    N, Cin, H, W = 2, 4, 16, 16
    Cout = 8
    key = jax.random.PRNGKey(0)
    kx, kw_, kb = jax.random.split(key, 3)
    x = jax.random.normal(kx, (N, Cin, H, W), jnp.float32)
    w = 0.1 * jax.random.normal(kw_, (Cout, Cin, 3, 3), jnp.float32)
    b = 0.1 * jax.random.normal(kb, (Cout,), jnp.float32)

    # f32 XLA reference of the intended forward (kernel uses bf16 MXU operands
    # with f32 accumulation -> loose tolerance).
    xpad = jnp.pad(x, ((0, 0), (0, 0), (1, 1), (1, 1)), mode="reflect")
    ref = jax.lax.conv_general_dilated(
        xpad, w, (1, 1), "VALID",
        dimension_numbers=("NCHW", "OIHW", "NCHW")) + b[None, :, None, None]

    # Explicit multi-tile run (exercises interior + reflected boundary tiles).
    out = jax.jit(lambda x, w, b: conv_layer(x, w, b, stride=1, tile_h=8))(x, w, b)
    jax.block_until_ready(out)
    assert out.shape == (N, Cout, H, W) and out.dtype == jnp.float32
    err = float(jnp.max(jnp.abs(out - ref)))
    assert err < 5e-2, f"max abs err {err}"

    # Auto-tiled run (exercises the generation-aware tile picker).
    out2 = jax.jit(lambda x, w, b: conv_layer(x, w, b, stride=1))(x, w, b)
    jax.block_until_ready(out2)
    err2 = float(jnp.max(jnp.abs(out2 - ref)))
    assert err2 < 5e-2, f"max abs err {err2}"

    print("KERNEL_OK")
</pallas_src>

<mosaic_0001>
module attributes {stable_mosaic.version = 11 : i64} {
  func.func @kernel(%arg0: i32, %arg1: i32, %arg2: memref<1x1x18x4xbf16, #tpu.memory_space<vmem>>, %arg3: memref<1x8x18x4xbf16, #tpu.memory_space<vmem>>, %arg4: memref<1x1x18x4xbf16, #tpu.memory_space<vmem>>, %arg5: memref<3x12x8xbf16, #tpu.memory_space<vmem>>, %arg6: memref<1x8xf32, #tpu.memory_space<vmem>>, %arg7: memref<1x128x8xf32, #tpu.memory_space<vmem>>, %arg8: memref<160x12xbf16, #tpu.memory_space<vmem>>) attributes {dimension_semantics = [#tpu.dimension_semantics<parallel>, #tpu.dimension_semantics<parallel>], iteration_bounds = array<i64: 2, 2>, scalar_prefetch = 0 : i64, scratch_operands = 1 : i64, tpu.core_type = #tpu.core_type<tc>, window_params = [{transform_indices = @transform_0, window_bounds = array<i64: 1, 1, 18, 4>}, {transform_indices = @transform_1, window_bounds = array<i64: 1, 8, 18, 4>}, {transform_indices = @transform_2, window_bounds = array<i64: 1, 1, 18, 4>}, {pipeline_mode = #tpu.pipeline_mode<synchronous>, transform_indices = @transform_3, window_bounds = array<i64: 3, 12, 8>}, {pipeline_mode = #tpu.pipeline_mode<synchronous>, transform_indices = @transform_4, window_bounds = array<i64: 1, 8>}, {transform_indices = @transform_5, window_bounds = array<i64: 1, 128, 8>}]} {
    %c0 = arith.constant 0 : index
    %c0_0 = arith.constant 0 : index
    %c0_1 = arith.constant 0 : index
    %c0_2 = arith.constant 0 : index
    %0 = vector.load %arg2[%c0, %c0_0, %c0_1, %c0_2] : memref<1x1x18x4xbf16, #tpu.memory_space<vmem>>, vector<1x1x16x4xbf16>
    %1 = vector.shape_cast %0 : vector<1x1x16x4xbf16> to vector<16x4xbf16>
    %c0_3 = arith.constant 0 : index
    %c0_4 = arith.constant 0 : index
    %2 = vector.load %arg8[%c0_3, %c0_4] : memref<160x12xbf16, #tpu.memory_space<vmem>>, vector<16x4xbf16>
    tpu.vector_store %arg8[%c0_3, %c0_4], %1 {strides = array<i32>} : memref<160x12xbf16, #tpu.memory_space<vmem>>, vector<16x4xbf16>,
    %c0_5 = arith.constant 0 : index
    %c0_6 = arith.constant 0 : index
    %c0_7 = arith.constant 0 : index
    %c0_8 = arith.constant 0 : index
    %3 = vector.load %arg3[%c0_5, %c0_6, %c0_7, %c0_8] : memref<1x8x18x4xbf16, #tpu.memory_space<vmem>>, vector<1x8x16x4xbf16>
    %4 = vector.shape_cast %3 : vector<1x8x16x4xbf16> to vector<8x16x4xbf16>
    %5 = vector.shape_cast %4 : vector<8x16x4xbf16> to vector<128x4xbf16>
    %c16 = arith.constant 16 : index
    %c0_9 = arith.constant 0 : index
    %6 = vector.load %arg8[%c16, %c0_9] : memref<160x12xbf16, #tpu.memory_space<vmem>>, vector<128x4xbf16>
    tpu.vector_store %arg8[%c16, %c0_9], %5 {strides = array<i32>} : memref<160x12xbf16, #tpu.memory_space<vmem>>, vector<128x4xbf16>,
    %c0_10 = arith.constant 0 : index
    %c0_11 = arith.constant 0 : index
    %c0_12 = arith.constant 0 : index
    %c0_13 = arith.constant 0 : index
    %7 = vector.load %arg4[%c0_10, %c0_11, %c0_12, %c0_13] : memref<1x1x18x4xbf16, #tpu.memory_space<vmem>>, vector<1x1x16x4xbf16>
    %8 = vector.shape_cast %7 : vector<1x1x16x4xbf16> to vector<16x4xbf16>
    %c144 = arith.constant 144 : index
    %c0_14 = arith.constant 0 : index
    %9 = vector.load %arg8[%c144, %c0_14] : memref<160x12xbf16, #tpu.memory_space<vmem>>, vector<16x4xbf16>
    tpu.vector_store %arg8[%c144, %c0_14], %8 {strides = array<i32>} : memref<160x12xbf16, #tpu.memory_space<vmem>>, vector<16x4xbf16>,
    %c0_15 = arith.constant 0 : index
    %c0_16 = arith.constant 0 : index
    %c1 = arith.constant 1 : index
    %c0_17 = arith.constant 0 : index
    %10 = vector.load %arg2[%c0_15, %c0_16, %c1, %c0_17] : memref<1x1x18x4xbf16, #tpu.memory_space<vmem>>, vector<1x1x16x4xbf16>
    %11 = vector.shape_cast %10 : vector<1x1x16x4xbf16> to vector<16x4xbf16>
    %c0_18 = arith.constant 0 : index
    %c4 = arith.constant 4 : index
    %12 = vector.load %arg8[%c0_18, %c4] : memref<160x12xbf16, #tpu.memory_space<vmem>>, vector<16x4xbf16>
    tpu.vector_store %arg8[%c0_18, %c4], %11 {strides = array<i32>} : memref<160x12xbf16, #tpu.memory_space<vmem>>, vector<16x4xbf16>,
    %c0_19 = arith.constant 0 : index
    %c0_20 = arith.constant 0 : index
    %c1_21 = arith.constant 1 : index
    %c0_22 = arith.constant 0 : index
    %13 = vector.load %arg3[%c0_19, %c0_20, %c1_21, %c0_22] : memref<1x8x18x4xbf16, #tpu.memory_space<vmem>>, vector<1x8x16x4xbf16>
    %14 = vector.shape_cast %13 : vector<1x8x16x4xbf16> to vector<8x16x4xbf16>
    %15 = vector.shape_cast %14 : vector<8x16x4xbf16> to vector<128x4xbf16>
    %c16_23 = arith.constant 16 : index
    %c4_24 = arith.constant 4 : index
    %16 = vector.load %arg8[%c16_23, %c4_24] : memref<160x12xbf16, #tpu.memory_space<vmem>>, vector<128x4xbf16>
    tpu.vector_store %arg8[%c16_23, %c4_24], %15 {strides = array<i32>} : memref<160x12xbf16, #tpu.memory_space<vmem>>, vector<128x4xbf16>,
    %c0_25 = arith.constant 0 : index
    %c0_26 = arith.constant 0 : index
    %c1_27 = arith.constant 1 : index
    %c0_28 = arith.constant 0 : index
    %17 = vector.load %arg4[%c0_25, %c0_26, %c1_27, %c0_28] : memref<1x1x18x4xbf16, #tpu.memory_space<vmem>>, vector<1x1x16x4xbf16>
    %18 = vector.shape_cast %17 : vector<1x1x16x4xbf16> to vector<16x4xbf16>
    %c144_29 = arith.constant 144 : index
    %c4_30 = arith.constant 4 : index
    %19 = vector.load %arg8[%c144_29, %c4_30] : memref<160x12xbf16, #tpu.memory_space<vmem>>, vector<16x4xbf16>
    tpu.vector_store %arg8[%c144_29, %c4_30], %18 {strides = array<i32>} : memref<160x12xbf16, #tpu.memory_space<vmem>>, vector<16x4xbf16>,
    %c0_31 = arith.constant 0 : index
    %c0_32 = arith.constant 0 : index
    %c2 = arith.constant 2 : index
    %c0_33 = arith.constant 0 : index
    %20 = vector.load %arg2[%c0_31, %c0_32, %c2, %c0_33] : memref<1x1x18x4xbf16, #tpu.memory_space<vmem>>, vector<1x1x16x4xbf16>
    %21 = vector.shape_cast %20 : vector<1x1x16x4xbf16> to vector<16x4xbf16>
    %c0_34 = arith.constant 0 : index
    %c8 = arith.constant 8 : index
    %22 = vector.load %arg8[%c0_34, %c8] : memref<160x12xbf16, #tpu.memory_space<vmem>>, vector<16x4xbf16>
    tpu.vector_store %arg8[%c0_34, %c8], %21 {strides = array<i32>} : memref<160x12xbf16, #tpu.memory_space<vmem>>, vector<16x4xbf16>,
    %c0_35 = arith.constant 0 : index
    %c0_36 = arith.constant 0 : index
    %c2_37 = arith.constant 2 : index
    %c0_38 = arith.constant 0 : index
    %23 = vector.load %arg3[%c0_35, %c0_36, %c2_37, %c0_38] : memref<1x8x18x4xbf16, #tpu.memory_space<vmem>>, vector<1x8x16x4xbf16>
    %24 = vector.shape_cast %23 : vector<1x8x16x4xbf16> to vector<8x16x4xbf16>
    %25 = vector.shape_cast %24 : vector<8x16x4xbf16> to vector<128x4xbf16>
    %c16_39 = arith.constant 16 : index
    %c8_40 = arith.constant 8 : index
    %26 = vector.load %arg8[%c16_39, %c8_40] : memref<160x12xbf16, #tpu.memory_space<vmem>>, vector<128x4xbf16>
    tpu.vector_store %arg8[%c16_39, %c8_40], %25 {strides = array<i32>} : memref<160x12xbf16, #tpu.memory_space<vmem>>, vector<128x4xbf16>,
    %c0_41 = arith.constant 0 : index
    %c0_42 = arith.constant 0 : index
    %c2_43 = arith.constant 2 : index
    %c0_44 = arith.constant 0 : index
    %27 = vector.load %arg4[%c0_41, %c0_42, %c2_43, %c0_44] : memref<1x1x18x4xbf16, #tpu.memory_space<vmem>>, vector<1x1x16x4xbf16>
    %28 = vector.shape_cast %27 : vector<1x1x16x4xbf16> to vector<16x4xbf16>
    %c144_45 = arith.constant 144 : index
    %c8_46 = arith.constant 8 : index
    %29 = vector.load %arg8[%c144_45, %c8_46] : memref<160x12xbf16, #tpu.memory_space<vmem>>, vector<16x4xbf16>
    tpu.vector_store %arg8[%c144_45, %c8_46], %28 {strides = array<i32>} : memref<160x12xbf16, #tpu.memory_space<vmem>>, vector<16x4xbf16>,
    %c0_47 = arith.constant 0 : index
    %c0_48 = arith.constant 0 : index
    %30 = vector.load %arg8[%c0_47, %c0_48] : memref<160x12xbf16, #tpu.memory_space<vmem>>, vector<128x12xbf16>
    %c0_49 = arith.constant 0 : index
    %c0_50 = arith.constant 0 : index
    %c0_51 = arith.constant 0 : index
    %31 = vector.load %arg5[%c0_49, %c0_50, %c0_51] : memref<3x12x8xbf16, #tpu.memory_space<vmem>>, vector<1x12x8xbf16>
    %32 = vector.shape_cast %31 : vector<1x12x8xbf16> to vector<12x8xbf16>
    %cst = arith.constant dense<0.000000e+00> : vector<128x8xf32>
    %33 = tpu.matmul %30, %32, %cst {dimension_numbers = #tpu.dot_dimension_numbers<[1], [0], [0], [1], [0, 0, 1, 1], [], []>} : vector<128x12xbf16>, vector<12x8xbf16>, vector<128x8xf32> -> vector<128x8xf32>
    %c16_52 = arith.constant 16 : index
    %c0_53 = arith.constant 0 : index
    %34 = vector.load %arg8[%c16_52, %c0_53] : memref<160x12xbf16, #tpu.memory_space<vmem>>, vector<128x12xbf16>
    %c1_54 = arith.constant 1 : index
    %c0_55 = arith.constant 0 : index
    %c0_56 = arith.constant 0 : index
    %35 = vector.load %arg5[%c1_54, %c0_55, %c0_56] : memref<3x12x8xbf16, #tpu.memory_space<vmem>>, vector<1x12x8xbf16>
    %36 = vector.shape_cast %35 : vector<1x12x8xbf16> to vector<12x8xbf16>
    %cst_57 = arith.constant dense<0.000000e+00> : vector<128x8xf32>
    %37 = tpu.matmul %34, %36, %cst_57 {dimension_numbers = #tpu.dot_dimension_numbers<[1], [0], [0], [1], [0, 0, 1, 1], [], []>} : vector<128x12xbf16>, vector<12x8xbf16>, vector<128x8xf32> -> vector<128x8xf32>
    %38 = arith.addf %33, %37 : vector<128x8xf32>
    %c32 = arith.constant 32 : index
    %c0_58 = arith.constant 0 : index
    %39 = vector.load %arg8[%c32, %c0_58] : memref<160x12xbf16, #tpu.memory_space<vmem>>, vector<128x12xbf16>
    %c2_59 = arith.constant 2 : index
    %c0_60 = arith.constant 0 : index
    %c0_61 = arith.constant 0 : index
    %40 = vector.load %arg5[%c2_59, %c0_60, %c0_61] : memref<3x12x8xbf16, #tpu.memory_space<vmem>>, vector<1x12x8xbf16>
    %41 = vector.shape_cast %40 : vector<1x12x8xbf16> to vector<12x8xbf16>
    %cst_62 = arith.constant dense<0.000000e+00> : vector<128x8xf32>
    %42 = tpu.matmul %39, %41, %cst_62 {dimension_numbers = #tpu.dot_dimension_numbers<[1], [0], [0], [1], [0, 0, 1, 1], [], []>} : vector<128x12xbf16>, vector<12x8xbf16>, vector<128x8xf32> -> vector<128x8xf32>
    %43 = arith.addf %38, %42 : vector<128x8xf32>
    %c0_63 = arith.constant 0 : index
    %c0_64 = arith.constant 0 : index
    %44 = vector.load %arg6[%c0_63, %c0_64] : memref<1x8xf32, #tpu.memory_space<vmem>>, vector<1x8xf32>
    %45 = vector.broadcast %44 : vector<1x8xf32> to vector<128x8xf32>
    %46 = arith.addf %43, %45 : vector<128x8xf32>
    %c0_65 = arith.constant 0 : index
    %c0_66 = arith.constant 0 : index
    %c0_67 = arith.constant 0 : index
    %47 = vector.load %arg7[%c0_65, %c0_66, %c0_67] : memref<1x128x8xf32, #tpu.memory_space<vmem>>, vector<1x128x8xf32>
    %48 = vector.shape_cast %47 : vector<1x128x8xf32> to vector<128x8xf32>
    %49 = vector.shape_cast %46 : vector<128x8xf32> to vector<1x128x8xf32>
    tpu.vector_store %arg7[%c0_65, %c0_66, %c0_67], %49 {strides = array<i32>} : memref<1x128x8xf32, #tpu.memory_space<vmem>>, vector<1x128x8xf32>,
    return
  }
  func.func @transform_0(%arg0: i32, %arg1: i32) -> (i32, i32, i32, i32) {
    %c8_i32 = arith.constant 8 : i32
    %0 = arith.muli %arg1, %c8_i32 : i32
    %c1_i32 = arith.constant 1 : i32
    %1 = arith.subi %0, %c1_i32 : i32
    %2 = math.absi %1 : i32
    %c0_i32 = arith.constant 0 : i32
    %c0_i32_0 = arith.constant 0 : i32
    %c0_i32_1 = arith.constant 0 : i32
    return %arg0, %2, %c0_i32, %c0_i32_0 : i32, i32, i32, i32
  }
  func.func @transform_1(%arg0: i32, %arg1: i32) -> (i32, i32, i32, i32) {
    %c0_i32 = arith.constant 0 : i32
    %c0_i32_0 = arith.constant 0 : i32
    %c0_i32_1 = arith.constant 0 : i32
    return %arg0, %arg1, %c0_i32, %c0_i32_0 : i32, i32, i32, i32
  }
  func.func @transform_2(%arg0: i32, %arg1: i32) -> (i32, i32, i32, i32) {
    %c1_i32 = arith.constant 1 : i32
    %0 = arith.addi %arg1, %c1_i32 : i32
    %c8_i32 = arith.constant 8 : i32
    %1 = arith.muli %0, %c8_i32 : i32
    %c30_i32 = arith.constant 30 : i32
    %2 = arith.subi %c30_i32, %1 : i32
    %3 = arith.minsi %1, %2 : i32
    %c0_i32 = arith.constant 0 : i32
    %c0_i32_0 = arith.constant 0 : i32
    %c0_i32_1 = arith.constant 0 : i32
    return %arg0, %3, %c0_i32, %c0_i32_0 : i32, i32, i32, i32
  }
  func.func @transform_3(%arg0: i32, %arg1: i32) -> (i32, i32, i32) {
    %c0_i32 = arith.constant 0 : i32
    %c0_i32_0 = arith.constant 0 : i32
    %c0_i32_1 = arith.constant 0 : i32
    %c0_i32_2 = arith.constant 0 : i32
    return %c0_i32, %c0_i32_0, %c0_i32_1 : i32, i32, i32
  }
  func.func @transform_4(%arg0: i32, %arg1: i32) -> (i32, i32) {
    %c0_i32 = arith.constant 0 : i32
    %c0_i32_0 = arith.constant 0 : i32
    %c0_i32_1 = arith.constant 0 : i32
    return %c0_i32, %c0_i32_0 : i32, i32
  }
  func.func @transform_5(%arg0: i32, %arg1: i32) -> (i32, i32, i32) {
    %c0_i32 = arith.constant 0 : i32
    %c0_i32_0 = arith.constant 0 : i32
    return %arg0, %arg1, %c0_i32 : i32, i32, i32
  }
}

</mosaic_0001>

<bundles_post_ra>
// kernel: _lambda_.1
= control target key start
LH: loop header
LB: loop body
LE: loop exit
PB: predicated region body
PF: predicated region fallthrough
CT: control target
= control target key end

     0   :  { %s1843_s18 = smov 0   ;;  %s1845_s19 = smov 0   ;;  %s2324_s0 = inlined_call_operand.vmem [shape: bf16[2,16,18,4], index: 0, kind: input, shape index: {}, may-alias: {0,1,2}]   ;;  %s2325_s1 = inlined_call_operand.vmem [shape: bf16[2,16,18,4], index: 1, kind: input, shape index: {}, may-alias: {0,1,2}]   ;;  %s2326_s2 = inlined_call_operand.vmem [shape: bf16[2,16,18,4], index: 2, kind: input, shape index: {}, may-alias: {0,1,2}]   ;;  %s2327_s3 = inlined_call_operand.vmem [shape: bf16[3,12,8], index: 3, kind: input, shape index: {}]   ;;  %s2328_s4 = inlined_call_operand.vmem [shape: f32[1,8], index: 4, kind: input, shape index: {}]   ;;  %s2329_s5 = inlined_call_operand.vmem [shape: f32[2,256,8], index: 5, kind: output, shape index: {}]  }
   0x1   :  { %s1847_s20 = smov 0   ;;  %s1849_s21 = smov 0  }
   0x2   :  { %s1851_s22 = smov 0  }
   0x3 LB: > { %s24_s23 = sadd.s32 1, %s1801_s20  ;;  %s27_s24 = sadd.s32 1, %s1805_s21  ;;  %s1809_s22 = sphi %s1851_s22, %s15_s22   ;;  %s1805_s21 = sphi %s1849_s21, %s2337_s21   ;;  %s1801_s20 = sphi %s1847_s20, %s2336_s20   ;;  %s1797_s19 = sphi %s1845_s19, %s2335_s19   ;;  %s1793_s18 = sphi %s1843_s18, %s2334_s18  }
   0x4   : > { %p25_p0 = scmp.ge.s32.totalorder %s24_s23, 2  ;;  %p1564_p1 = scmp.ge.s32.totalorder %s1809_s22, 1 }
   0x5   : > { %p281_p2 = scmp.lt.s32.totalorder %s1809_s22, 5 }
   0x6   : > { %s2339_s23 = smov (%p25_p0, %s24_s23), 0  ;;  %s2341_s24 = smov (!%p25_p0, %s27_s24), %s1805_s21 }
   0x7   : > { %p282_p3 = pnand %p1564_p1, %p281_p2  ;;  %p29_p4 = scmp.ge.s32.totalorder %s2341_s24, 2 }
   0x8   : > { %s1565_s25 = sshll.u32 (!%p282_p3), %s1793_s18, 3  ;;  %p351_p5 = scmp.lt.s32.totalorder (!%p282_p3), %s1797_s19, 1 }
   0x9   : > { %s2343_s24 = smov (%p29_p4, %s2341_s24), 0  ;;  %285 = sbr.rel (%p282_p3) target bundleno = 424 (0x1a8), region = 40 }
   0xa   : > { %p368_p6 = scmp.lt.s32.totalorder (!%p282_p3), %s1565_s25, 15  ;;  %s1566_s29 = sadd.s32 (!%p282_p3), 4294967295, %s1565_s25 }
   0xb   : > { %s348_s30 = sshra.s32 (!%p282_p3), %s1566_s29, 31  ;;  %s1881_s6 = sadd.s32 (!%p282_p3), 8, %s1565_s25 }
   0xc   : > { %s349_s8 = sadd.s32 (!%p282_p3), %s1566_s29, %s348_s30  ;;  %s1811_s15 = smov (!%p282_p3), 8  }
   0xd   : > { %s350_s10 = sxor.u32 (!%p282_p3), %s349_s8, %s348_s30  ;;  %s378_s17 = ssub.s32 (!%p282_p3), 30, %s1881_s6 }
   0xe   : > { %s2345_s19 = smov (!%p351_p5, %s1797_s19), 1  ;;  %vm807_vm0 = vcmask 1042432   ;;  %vm808_vm1 = vcmask 1046532   ;;  %vm450_vm3 = vsmask.f32 3328  ;;  %p353_p7 = scmp.lt.s32.totalorder %s350_s10, 15 }
   0xf   : > { %s369_s26 = scalar_select %p368_p6, %s1565_s25, 15  ;;  %vm1889_vm2 = vmor %vm807_vm0, %vm808_vm1  ;;  %vm451_vm4 = vsmask.f32 7440  ;;  %vm408_vm6 = vcmask 27648   ;;  %vm1108_vm7 = vcmask 1045504   ;;  %vm483_vm8 = vcmask 60448  }
  0x10   : > { %s1879_s27 = smul.u32 48, %s2345_s19  ;;  %s2347_s10 = smov (!%p353_p7, %s350_s10), 15  ;;  %vm1913_vm5 = vmor %vm450_vm3, %vm451_vm4  ;;  %vm823_vm9 = vcmask 93248   ;;  %vm1083_vm10 = vcmask 97280   ;;  %vm1402_vm11 = vcmask 64512  }
  0x11   : > { %s1726_s28 = smul.u32 3, %s369_s26  ;;  %p379_p8 = scmp.lt.s32.totalorder %s1881_s6, %s378_s17 }
  0x12   : > { %s1724_s14 = smul.u32 3, %s2347_s10  ;;  %s1812_s30 = smov 4  }
  0x13   : > { %s372_s7 = sadd.s32 %s1726_s28, %s1879_s27  ;;  %s2349_s6 = smov (!%p379_p8, %s1881_s6), %s378_s17 }
  0x14   : > { %s1569_s9 = sshll.u32 %s372_s7, 2  ;;  %s357_s16 = sadd.s32 %s1879_s27, %s1724_s14 }
  0x15   : > { %s1887_s13 = scalar_lea.vmem %s2325_s1, %s1569_s9  ;;  %s1567_s25 = sshll.u32 %s357_s16, 2 }
  0x16   : > { %v844_v1 = vld [vmem:[%s1887_s13 + $0x48] sm:$0xe]  ;;  %v845_v2 = vld [vmem:[%s1887_s13 + $0x4c] sm:$0xf]  ;;  %v846_v3 = vld [vmem:[%s1887_s13 + $0x50] sm:$0x1]  ;;  %s1921_s29 = scalar_lea.vmem %s2324_s0, %s1567_s25 }
  0x17   : > { %v1582_v4 = vrot.slane %v844_v1, 9  ;;  %v918_v5 = vrot.slane %v845_v2, 5  ;;  %v921_v6 = vrot.slane %v846_v3, 5  ;;  %v489_v7 = vld [vmem:[%s1887_s13 + $0xc] sm:$0xf]  ;;  %p383_p9 = scmp.lt.s32.totalorder %s2349_s6, 15 }
  0x18   : > { %v490_v8 = vld [vmem:[%s1887_s13 + $0x10] sm:$0xf]  ;;  %v535_v9 = vshrl.u32 %v489_v7, 16  ;;  %v538_v10 = vshll.u32 %v489_v7, 16  ;;  %v504_v11 = vld [vmem:[%s1887_s13 + $0x48] sm:$0xf] }
  0x19   : > { %v919_v12 = vsel %vm1889_vm2, %v1582_v4, %v918_v5  ;;  %v920_v13 = vrot.slane %v918_v5, 4  ;;  %v544_v14 = vshll.u32 %v490_v8, 16  ;;  %v548_v15 = vshrl.u32 %v490_v8, 16  ;;  %v505_v16 = vld [vmem:[%s1887_s13 + $0x4c] sm:$0xf]  ;;  %s2351_s6 = smov (!%p383_p9, %s2349_s6), 15 }
  0x1a   : > { %954 = vrot.lane.b32.xlu0 %v919_v12, %s1811_s15  ;;  %v537_v17 = vrot.slane %v535_v9, 4  ;;  %v540_v18 = vrot.slane %v538_v10, 5  ;;  %v655_v19 = vshrl.u32 %v504_v11, 16  ;;  %v658_v20 = vshll.u32 %v504_v11, 16  ;;  %v491_v25 = vld [vmem:[%s1887_s13 + $0x14] sm:$0x1] }
  0x1b   : > { %v922_v21 = vsel %vm1889_vm2, %v920_v13, %v921_v6  ;;  %v546_v22 = vrot.slane %v544_v14, 5  ;;  %v664_v23 = vshll.u32 %v505_v16, 16  ;;  %v668_v24 = vshrl.u32 %v505_v16, 16  ;;  %v829_v30 = vld [vmem:[%s1887_s13 + $0xc] sm:$0xe]  ;;  %s1727_s7 = smul.u32 3, %s2351_s6 }
  0x1c   : > { %956 = vrot.lane.b32.xlu1 %v922_v21, %s1811_s15  ;;  %v541_v26 = vor.u32 %v540_v18, %v537_v17  ;;  %v657_v27 = vrot.slane %v655_v19, 4  ;;  %v660_v28 = vrot.slane %v658_v20, 5  ;;  %v550_v29 = vrot.slane %v548_v15, 4  ;;  %v506_v33 = vld [vmem:[%s1887_s13 + $0x50] sm:$0x1] }
  0x1d   : > { %v666_v32 = vrot.slane %v664_v23, 5  ;;  %v670_v34 = vrot.slane %v668_v24, 4  ;;  %v554_v38 = vshll.u32 %v491_v25, 16  ;;  %v448_v39 = vld [vmem:[%s1921_s29 + $0x4] sm:$0xf]  ;;  %v1577_v42 = vrot.slane %v829_v30, 9  ;;  %s1958_s8 = sadd.s32 %s1727_s7, %s1879_s27 }
  0x1e   : > { %v542_v35 = vrot.slane %v541_v26, 4  ;;  %v661_v36 = vor.u32 %v660_v28, %v657_v27  ;;  %v551_v37 = vor.u32 %v550_v29, %v546_v22  ;;  %v830_v40 = vld [vmem:[%s1887_s13 + $0x10] sm:$0xf]  ;;  %v463_v41 = vshll.u32 %v448_v39, 16  ;;  %v486_v43 = vld [vmem:[%s1887_s13] sm:$0xf] }
  0x1f   : > { %v674_v46 = vshll.u32 %v506_v33, 16  ;;  %v467_v47 = vshrl.u32 %v448_v39, 16  ;;  %v671_v48 = vor.u32 %v670_v34, %v666_v32  ;;  %v883_v49 = vrot.slane %v830_v40, 5  ;;  %v487_v50 = vld [vmem:[%s1887_s13 + $0x4] sm:$0xf]  ;;  %s1571_s27 = sshll.u32 %s1958_s8, 2 }
  0x20   : > { %v547_v44 = vsel %vm1913_vm5, %v542_v35, %v546_v22  ;;  %v662_v45 = vrot.slane %v661_v36, 4  ;;  %v552_v52 = vrot.slane %v551_v37, 4  ;;  %v556_v53 = vrot.slane %v554_v38, 5  ;;  %v831_v59 = vld [vmem:[%s1887_s13 + $0x14] sm:$0x1]  ;;  %s2065_s10 = scalar_lea.vmem %s2326_s2, %s1571_s27 }
  0x21   : > { %v511_v54 = vshrl.u32 %v486_v43, 16  ;;  %v1936_v55 = vrot.slane %v463_v41, 5  ;;  %v469_v56 = vrot.slane %v467_v47, 4  ;;  %v884_v57 = vsel %vm1889_vm2, %v1577_v42, %v883_v49  ;;  %v449_v61 = vld [vmem:[%s1921_s29 + $0x8] sm:$0x1] }
  0x22   : > { %706 = vrot.lane.b32.xlu0 %v547_v44, %s1812_s30  ;;  %v667_v51 = vsel %vm1913_vm5, %v662_v45, %v666_v32  ;;  %v514_v58 = vshll.u32 %v486_v43, 16  ;;  %v676_v60 = vrot.slane %v674_v46, 5  ;;  %934 = vrot.lane.b32.xlu2 %v884_v57, %s1811_s15  ;;  %v520_v62 = vshll.u32 %v487_v50, 16  ;;  %v488_v6 = vld [vmem:[%s1887_s13 + $0x8] sm:$0x1] }
  0x23   : > { %v524_v63 = vshrl.u32 %v487_v50, 16  ;;  %v672_v1 = vrot.slane %v671_v48, 4  ;;  %v513_v2 = vrot.slane %v511_v54, 4  ;;  %v885_v4 = vrot.slane %v883_v49, 4  ;;  %v447_v19 = vld [vmem:[%s1921_s29] sm:$0xf] }
  0x24   : > { %726 = vrot.lane.b32.xlu1 %v667_v51, %s1812_s30  ;;  %v516_v3 = vrot.slane %v514_v58, 5  ;;  %v886_v5 = vrot.slane %v831_v59, 5  ;;  %v557_v7 = vsel %vm1913_vm5, %v552_v52, %v556_v53  ;;  %v470_v8 = vor.u32 %v469_v56, %v1936_v55  ;;  %v802_v21 = vld [vmem:[%s1921_s29 + $0x4] sm:$0xf]  ;;  %v492_v24 = vld [vmem:[%s1887_s13 + $0x18] sm:$0xf] }
  0x25   : > { %v473_v9 = vshll.u32 %v449_v61, 16  ;;  %v522_v10 = vrot.slane %v520_v62, 5  ;;  %v526_v11 = vrot.slane %v524_v63, 4  ;;  %v677_v12 = vsel %vm1913_vm5, %v672_v1, %v676_v60  ;;  %v801_v27 = vld [vmem:[%s1921_s29] sm:$0xe] }
  0x26   : > { %v517_v13 = vor.u32 %v516_v3, %v513_v2  ;;  %v887_v14 = vsel %vm1889_vm2, %v885_v4, %v886_v5  ;;  %v530_v15 = vshll.u32 %v488_v6, 16  ;;  %v471_v17 = vrot.slane %v470_v8, 4  ;;  %v803_v33 = vld [vmem:[%s1921_s29 + $0x8] sm:$0x1]  ;;  %v827_v41 = vld [vmem:[%s1887_s13 + $0x4] sm:$0xf] }
  0x27   : > { %v527_v16 = vor.u32 %v526_v11, %v522_v10  ;;  %v475_v18 = vrot.slane %v473_v9, 5  ;;  %v454_v25 = vshrl.u32 %v447_v19, 16  ;;  %v812_v28 = vrot.slane %v802_v21, 5  ;;  %v507_v42 = vld [vmem:[%s1887_s13 + $0x54] sm:$0xf] }
  0x28   : > { %v518_v20 = vrot.slane %v517_v13, 4  ;;  %v532_v23 = vrot.slane %v530_v15, 5  ;;  %v457_v30 = vshll.u32 %v447_v19, 16  ;;  %v559_v35 = vshrl.u32 %v492_v24, 16  ;;  %v508_v46 = vld [vmem:[%s1887_s13 + $0x58] sm:$0xf] }
  0x29   : > { %v528_v22 = vrot.slane %v527_v16, 4  ;;  %v476_v26 = vsel %vm1913_vm5, %v471_v17, %v475_v18  ;;  %v456_v29 = vrot.slane %v454_v25, 4  ;;  %v562_v36 = vshll.u32 %v492_v24, 16  ;;  %v493_v47 = vld [vmem:[%s1887_s13 + $0x1c] sm:$0xf] }
  0x2a   : > { %708 = vrot.lane.b32.xlu0 %v557_v7, %s1812_s30  ;;  %936 = vrot.lane.b32.xlu2 %v887_v14, %s1811_s15  ;;  %v523_v32 = vsel %vm1913_vm5, %v518_v20, %v522_v10  ;;  %v459_v37 = vrot.slane %v457_v30, 5  ;;  %v1575_v38 = vrot.slane %v801_v27, 9  ;;  %v814_v39 = vrot.slane %v812_v28, 4  ;;  %v828_v54 = vld [vmem:[%s1887_s13 + $0x8] sm:$0x1] }
  0x2b   : > { %v533_v34 = vsel %vm1913_vm5, %v528_v22, %v532_v23  ;;  %v815_v40 = vrot.slane %v803_v33, 5  ;;  %v561_v44 = vrot.slane %v559_v35, 4  ;;  %v564_v45 = vrot.slane %v562_v36, 5  ;;  %v826_v62 = vld [vmem:[%s1887_s13] sm:$0xe] }
  0x2c   : > { %728 = vrot.lane.b32.xlu1 %v677_v12, %s1812_s30  ;;  %v460_v43 = vor.u32 %v459_v37, %v456_v29  ;;  %v813_v49 = vsel %vm1889_vm2, %v1575_v38, %v812_v28  ;;  %v876_v50 = vrot.slane %v827_v41, 5  ;;  %v679_v51 = vshrl.u32 %v507_v42, 16  ;;  %v509_v8 = vld [vmem:[%s1887_s13 + $0x5c] sm:$0x1]  ;;  %v494_v10 = vld [vmem:[%s1887_s13 + $0x20] sm:$0x1] }
  0x2d   : > { %v682_v52 = vshll.u32 %v507_v42, 16  ;;  %v816_v53 = vsel %vm1889_vm2, %v814_v39, %v815_v40  ;;  %v688_v56 = vshll.u32 %v508_v46, 16  ;;  %v692_v57 = vshrl.u32 %v508_v46, 16  ;;  %v833_v20 = vld [vmem:[%s1887_s13 + $0x1c] sm:$0xf] }
  0x2e   : > { %v461_v48 = vrot.slane %v460_v43, 4  ;;  %v565_v58 = vor.u32 %v564_v45, %v561_v44  ;;  %v568_v59 = vshll.u32 %v493_v47, 16  ;;  %v572_v60 = vshrl.u32 %v493_v47, 16  ;;  %v495_v21 = vld [vmem:[%s1887_s13 + $0x24] sm:$0xf] }
  0x2f   : > { %v878_v63 = vrot.slane %v876_v50, 4  ;;  %v879_v1 = vrot.slane %v828_v54, 5  ;;  %v681_v2 = vrot.slane %v679_v51, 4  ;;  %v684_v3 = vrot.slane %v682_v52, 5  ;;  %v496_v24 = vld [vmem:[%s1887_s13 + $0x28] sm:$0xf] }
  0x30   : > { %v466_v61 = vsel %vm1913_vm5, %v461_v48, %v1936_v55  ;;  %v690_v4 = vrot.slane %v688_v56, 5  ;;  %v694_v5 = vrot.slane %v692_v57, 4  ;;  %v566_v6 = vrot.slane %v565_v58, 4  ;;  %v847_v37 = vld [vmem:[%s1887_s13 + $0x54] sm:$0xe] }
  0x31   : > { %v570_v7 = vrot.slane %v568_v59, 5  ;;  %v1576_v9 = vrot.slane %v826_v62, 9  ;;  %v574_v55 = vrot.slane %v572_v60, 4  ;;  %v880_v11 = vsel %vm1889_vm2, %v878_v63, %v879_v1  ;;  %v848_v38 = vld [vmem:[%s1887_s13 + $0x58] sm:$0xf] }
  0x32   : > { %479 = vrot.lane.b32.xlu0 %v476_v26, %s1812_s30  ;;  %704 = vrot.lane.b32.xlu2 %v533_v34, %s1812_s30  ;;  %v685_v12 = vor.u32 %v684_v3, %v681_v2  ;;  %v695_v13 = vor.u32 %v694_v5, %v690_v4  ;;  %v698_v14 = vshll.u32 %v509_v8, 16  ;;  %v578_v18 = vshll.u32 %v494_v10, 16  ;;  %v832_v39 = vld [vmem:[%s1887_s13 + $0x18] sm:$0xe]  ;;  %v502_v46 = vld [vmem:[%s1887_s13 + $0x40] sm:$0xf] }
  0x33   : > { %v571_v15 = vsel %vm1913_vm5, %v566_v6, %v570_v7  ;;  %v877_v16 = vsel %vm1889_vm2, %v1576_v9, %v876_v50  ;;  %v575_v17 = vor.u32 %v574_v55, %v570_v7  ;;  %v890_v28 = vrot.slane %v833_v20, 5  ;;  %v501_v51 = vld [vmem:[%s1887_s13 + $0x3c] sm:$0xf]  ;;  %v503_v6 = vld [vmem:[%s1887_s13 + $0x44] sm:$0x1] }
  0x34   : > { %702 = vrot.lane.b32.xlu1 %v523_v32, %s1812_s30  ;;  %v686_v19 = vrot.slane %v685_v12, 4  ;;  %v696_v22 = vrot.slane %v695_v13, 4  ;;  %v700_v23 = vrot.slane %v698_v14, 5  ;;  %v580_v26 = vrot.slane %v578_v18, 5  ;;  %v834_v32 = vld [vmem:[%s1887_s13 + $0x20] sm:$0x1] }
  0x35   : > { %v576_v25 = vrot.slane %v575_v17, 4  ;;  %v583_v29 = vshrl.u32 %v495_v21, 16  ;;  %v586_v30 = vshll.u32 %v495_v21, 16  ;;  %v592_v33 = vshll.u32 %v496_v24, 16  ;;  %v849_v63 = vld [vmem:[%s1887_s13 + $0x5c] sm:$0x1] }
  0x36   : > { %v691_v27 = vsel %vm1913_vm5, %v686_v19, %v690_v4  ;;  %v596_v34 = vshrl.u32 %v496_v24, 16  ;;  %v701_v35 = vsel %vm1913_vm5, %v696_v22, %v700_v23  ;;  %v892_v40 = vrot.slane %v890_v28, 4  ;;  %v836_v17 = vld [vmem:[%s1887_s13 + $0x28] sm:$0xf]  ;;  %v499_v20 = vld [vmem:[%s1887_s13 + $0x34] sm:$0xf] }
  0x37   : > { %v581_v36 = vsel %vm1913_vm5, %v576_v25, %v580_v26  ;;  %v893_v41 = vrot.slane %v834_v32, 5  ;;  %v585_v42 = vrot.slane %v583_v29, 4  ;;  %v588_v43 = vrot.slane %v586_v30, 5  ;;  %v842_v23 = vld [vmem:[%s1887_s13 + $0x40] sm:$0xf] }
  0x38   : > { %v594_v44 = vrot.slane %v592_v33, 5  ;;  %v598_v45 = vrot.slane %v596_v34, 4  ;;  %v1583_v47 = vrot.slane %v847_v37, 9  ;;  %v925_v48 = vrot.slane %v848_v38, 5  ;;  %v498_v25 = vld [vmem:[%s1887_s13 + $0x30] sm:$0xf] }
  0x39   : > { %v1578_v50 = vrot.slane %v832_v39, 9  ;;  %v894_v52 = vsel %vm1889_vm2, %v892_v40, %v893_v41  ;;  %v640_v54 = vshll.u32 %v502_v46, 16  ;;  %v644_v56 = vshrl.u32 %v502_v46, 16  ;;  %v841_v29 = vld [vmem:[%s1887_s13 + $0x3c] sm:$0xe] }
  0x3a   : > { %817 = vrot.lane.b32.xlu0 %v813_v49, %s1811_s15  ;;  %477 = vrot.lane.b32.xlu2 %v466_v61, %s1812_s30  ;;  %v497_v49 = vld [vmem:[%s1887_s13 + $0x2c] sm:$0x1]  ;;  %v599_v57 = vor.u32 %v598_v45, %v594_v44  ;;  %v926_v59 = vsel %vm1889_vm2, %v1583_v47, %v925_v48  ;;  %v631_v61 = vshrl.u32 %v501_v51, 16  ;;  %v634_v62 = vshll.u32 %v501_v51, 16  ;;  %v843_v33 = vld [vmem:[%s1887_s13 + $0x44] sm:$0x1] }
  0x3b   : > { %v602_v58 = vshll.u32 %v497_v49, 16  ;;  %v891_v60 = vsel %vm1889_vm2, %v1578_v50, %v890_v28  ;;  %v642_v2 = vrot.slane %v640_v54, 5  ;;  %v646_v3 = vrot.slane %v644_v56, 4  ;;  %v837_v37 = vld [vmem:[%s1887_s13 + $0x2c] sm:$0x1] }
  0x3c   : > { %819 = vrot.lane.b32.xlu1 %v816_v53, %s1811_s15  ;;  %v589_v53 = vor.u32 %v588_v43, %v585_v42  ;;  %v600_v4 = vrot.slane %v599_v57, 4  ;;  %v927_v7 = vrot.slane %v925_v48, 4  ;;  %v928_v8 = vrot.slane %v849_v63, 5  ;;  %v500_v43 = vld [vmem:[%s1887_s13 + $0x38] sm:$0x1] }
  0x3d   : > { %v604_v5 = vrot.slane %v602_v58, 5  ;;  %v633_v9 = vrot.slane %v631_v61, 4  ;;  %v636_v55 = vrot.slane %v634_v62, 5  ;;  %v650_v12 = vshll.u32 %v503_v6, 16  ;;  %v839_v56 = vld [vmem:[%s1887_s13 + $0x34] sm:$0xf] }
  0x3e   : > { %v590_v1 = vrot.slane %v589_v53, 4  ;;  %v929_v14 = vsel %vm1889_vm2, %v927_v7, %v928_v8  ;;  %v897_v22 = vrot.slane %v836_v17, 5  ;;  %v620_v28 = vshrl.u32 %v499_v20, 16  ;;  %v766_v57 = vld [vmem:[%s2065_s10] sm:$0xf] }
  0x3f   : > { %v605_v13 = vsel %vm1913_vm5, %v600_v4, %v604_v5  ;;  %v652_v19 = vrot.slane %v650_v12, 5  ;;  %v911_v30 = vrot.slane %v842_v23, 5  ;;  %v1581_v38 = vrot.slane %v841_v29, 9  ;;  %v767_v4 = vld [vmem:[%s2065_s10 + $0x4] sm:$0xf] }
  0x40   : > { %v595_v10 = vsel %vm1913_vm5, %v590_v1, %v594_v44  ;;  %v622_v40 = vrot.slane %v620_v28, 4  ;;  %v914_v42 = vrot.slane %v843_v33, 5  ;;  %v899_v44 = vrot.slane %v897_v22, 4  ;;  %v423_v17 = vld [vmem:[%s1887_s13 + $0x48] sm:$0xf] }
  0x41   : > { %v913_v41 = vrot.slane %v911_v30, 4  ;;  %v900_v45 = vrot.slane %v837_v37, 5  ;;  %v912_v48 = vsel %vm1889_vm2, %v1581_v38, %v911_v30  ;;  %v626_v50 = vshll.u32 %v500_v43, 16  ;;  %439 = vst.msk [vmem:[#allocation2 + $0x38] sm:$0xf] %vm408_vm6, %v423_v17 }
  0x42   : > { %932 = vrot.lane.b32.xlu0 %v880_v11, %s1811_s15  ;;  %930 = vrot.lane.b32.xlu2 %v877_v16, %s1811_s15  ;;  %v647_v11 = vor.u32 %v646_v3, %v642_v2  ;;  %v835_v16 = vld [vmem:[%s1887_s13 + $0x24] sm:$0xe]  ;;  %v773_v61 = vshll.u32 %v766_v57, 16  ;;  %v904_v63 = vrot.slane %v839_v56, 5  ;;  %v779_v7 = vshll.u32 %v767_v4, 16 }
  0x43   : > { %v1579_v21 = vrot.slane %v835_v16, 9  ;;  %v915_v51 = vsel %vm1889_vm2, %v913_v41, %v914_v42  ;;  %v901_v53 = vsel %vm1889_vm2, %v899_v44, %v900_v45  ;;  %v414_v29 = vld [vmem:[%s1887_s13 + $0x10] sm:$0xf]  ;;  %v424_v33 = vld [vmem:[%s1887_s13 + $0x4c] sm:$0xf] }
  0x44   : > { %710 = vrot.lane.b32.xlu1 %v571_v15, %s1812_s30  ;;  %v637_v15 = vor.u32 %v636_v55, %v633_v9  ;;  %v648_v18 = vrot.slane %v647_v11, 4  ;;  %v775_v3 = vrot.slane %v773_v61, 5  ;;  %v840_v55 = vld [vmem:[%s1887_s13 + $0x38] sm:$0x1]  ;;  %v781_v12 = vrot.slane %v779_v7, 5 }
  0x45   : > { %v898_v32 = vsel %vm1889_vm2, %v1579_v21, %v897_v22  ;;  %v995_v21 = vld [vmem:[%s2065_s10 + $0x4] sm:$0xf]  ;;  %430 = vst.msk [vmem:[#allocation2 + $0x14] sm:$0xf] %vm408_vm6, %v414_v29  ;;  %v1720_v37 = vld [vmem:[%s2327_s3 + $0x10] sm:$0x30] }
  0x46   : > { %v638_v24 = vrot.slane %v637_v15, 4  ;;  %v653_v26 = vsel %vm1913_vm5, %v648_v18, %v652_v19  ;;  %v413_v15 = vld [vmem:[%s1887_s13 + $0xc] sm:$0xf]  ;;  %v768_v18 = vld [vmem:[%s2065_s10 + $0x8] sm:$0x1]  ;;  %v1002_v23 = vrot.slane %v995_v21, 5 }
  0x47   : > { %429 = vst.msk [vmem:[#allocation2 + $0x10] sm:$0xf] %vm408_vm6, %v413_v15  ;;  %v412_v31 = vld [vmem:[%s1887_s13 + $0x4] sm:$0xf]  ;;  %v411_v44 = vld [vmem:[%s1887_s13] sm:$0xf] }
  0x48   : > { %v643_v34 = vsel %vm1913_vm5, %v638_v24, %v642_v2  ;;  %v1004_v30 = vrot.slane %v1002_v23, 4  ;;  %440 = vst.msk [vmem:[#allocation2 + $0x3c] sm:$0xf] %vm408_vm6, %v424_v33  ;;  %v407_v43 = vld [vmem:[%s1921_s29 + $0x4] sm:$0xf] }
  0x49   : > { %428 = vst.msk [vmem:[#allocation2 + $0xc] sm:$0xf] %vm408_vm6, %v412_v31  ;;  %v416_v0 = vld [vmem:[%s1887_s13 + $0x1c] sm:$0xf]  ;;  %v422_v15 = vld [vmem:[%s1887_s13 + $0x40] sm:$0xf] }
  0x4a   : > { %730 = vrot.lane.b32.xlu0 %v691_v27, %s1812_s30  ;;  %712 = vrot.lane.b32.xlu2 %v581_v36, %s1812_s30  ;;  %v616_v27 = vshll.u32 %v499_v20, 16  ;;  %v610_v36 = vshll.u32 %v498_v25, 16  ;;  %v789_v20 = vshll.u32 %v768_v18, 16  ;;  %410 = vst.msk [vmem:[#allocation2 + $0x4] sm:$0xf] %vm408_vm6, %v407_v43 }
  0x4b   : > { %427 = vst.msk [vmem:[#allocation2 + $0x8] sm:$0xf] %vm408_vm6, %v411_v44 }
  0x4c   : > { %732 = vrot.lane.b32.xlu1 %v701_v35, %s1812_s30  ;;  %v607_v35 = vshrl.u32 %v498_v25, 16  ;;  %v618_v39 = vrot.slane %v616_v27, 5  ;;  %v612_v47 = vrot.slane %v610_v36, 5  ;;  %v791_v25 = vrot.slane %v789_v20, 5  ;;  %v1683_v36 = vld [vmem:[%s2327_s3 + $0x10] sm:$0xf] }
  0x4d   : > { %v1684_v38 = vor.u32 %v1720_v37, %v1683_v36  ;;  %432 = vst.msk [vmem:[#allocation2 + $0x1c] sm:$0xf] %vm408_vm6, %v416_v0  ;;  %v2245_v0 = vld [vmem:[%s2328_s4] ss:$0 sm:$0xff] }
  0x4e   : > { %v609_v46 = vrot.slane %v607_v35, 4  ;;  %v623_v49 = vor.u32 %v622_v40, %v618_v39  ;;  %v1711_v40 = vld [vmem:[%s2327_s3 + $0x8] sm:$0x30]  ;;  %438 = vst.msk [vmem:[#allocation2 + $0x34] sm:$0xf] %vm408_vm6, %v422_v15 }
  0x4f   : > { %v2126_v41 = vsel %vm1108_vm7, %v1684_v38, 0 }
  0x50   : > { %v613_v54 = vor.u32 %v612_v47, %v609_v46  ;;  %v624_v58 = vrot.slane %v623_v49, 4  ;;  %1324 = vmatpush.bf16.msra.mxu2 %v2126_v41  ;;  %v406_v47 = vld [vmem:[%s1921_s29] sm:$0xf] }
  0x51   : > { %409 = vst.msk [vmem:[#allocation2] sm:$0xf] %vm408_vm6, %v406_v47 }
  0x52   : > { %940 = vrot.lane.b32.xlu0 %v894_v52, %s1811_s15  ;;  %938 = vrot.lane.b32.xlu2 %v891_v60, %s1811_s15  ;;  %v838_v52 = vld [vmem:[%s1887_s13 + $0x30] sm:$0xe]  ;;  %v770_v60 = vshrl.u32 %v766_v57, 16  ;;  %v614_v1 = vrot.slane %v613_v54, 4  ;;  %v1709_v54 = vld [vmem:[%s2327_s3] sm:$0x30] }
  0x53   : > { %v1580_v62 = vrot.slane %v838_v52, 9 }
  0x54   : > { %958 = vrot.lane.b32.xlu1 %v926_v59, %s1811_s15  ;;  %v628_v59 = vrot.slane %v626_v50, 5  ;;  %v772_v2 = vrot.slane %v770_v60, 4  ;;  %v619_v9 = vsel %vm1913_vm5, %v614_v1, %v618_v39  ;;  %v1621_v39 = vld [vmem:[%s2327_s3 + $0x8] sm:$0xf] }
  0x55   : > { %v905_v8 = vsel %vm1889_vm2, %v1580_v62, %v904_v63  ;;  %v1622_v42 = vor.u32 %v1711_v40, %v1621_v39  ;;  %v415_v62 = vld [vmem:[%s1887_s13 + $0x18] sm:$0xf] }
  0x56   : > { %v629_v5 = vsel %vm1913_vm5, %v624_v58, %v628_v59  ;;  %v776_v6 = vor.u32 %v775_v3, %v772_v2  ;;  %431 = vst.msk [vmem:[#allocation2 + $0x18] sm:$0xf] %vm408_vm6, %v415_v62 }
  0x57   : > { %v1110_v45 = vsel %vm1108_vm7, %v1622_v42, 0 }
  0x58   : > { %v777_v11 = vrot.slane %v776_v6, 4  ;;  %1721 = vmatpush.bf16.msra.mxu3 %v1110_v45  ;;  %1119 = vmatpush.bf16.msra.mxu0 %v1110_v45 }
  0x5a   : > { %714 = vrot.lane.b32.xlu0 %v595_v10, %s1812_s30  ;;  %960 = vrot.lane.b32.xlu2 %v929_v14, %s1811_s15  ;;  %v783_v10 = vshrl.u32 %v767_v4, 16  ;;  %v907_v14 = vrot.slane %v840_v55, 5  ;;  %v782_v22 = vsel %vm1913_vm5, %v777_v11, %v781_v12  ;;  %v426_v4 = vld [vmem:[%s1887_s13 + $0x58] sm:$0xf]  ;;  %v417_v55 = vld [vmem:[%s1887_s13 + $0x24] sm:$0xf] }
  0x5b   : > { %442 = vst.msk [vmem:[#allocation2 + $0x44] sm:$0xf] %vm408_vm6, %v426_v4  ;;  %v418_v11 = vld [vmem:[%s1887_s13 + $0x28] sm:$0xf] }
  0x5c   : > { %716 = vrot.lane.b32.xlu1 %v605_v13, %s1812_s30  ;;  %v906_v13 = vrot.slane %v904_v63, 4  ;;  %v785_v16 = vrot.slane %v783_v10, 4  ;;  %v425_v63 = vld [vmem:[%s1887_s13 + $0x54] sm:$0xf]  ;;  %433 = vst.msk [vmem:[#allocation2 + $0x20] sm:$0xf] %vm408_vm6, %v417_v55 }
  0x5d   : > { %441 = vst.msk [vmem:[#allocation2 + $0x40] sm:$0xf] %vm408_vm6, %v425_v63 }
  0x5e   : > { %v786_v19 = vor.u32 %v785_v16, %v781_v12  ;;  %v908_v27 = vsel %vm1889_vm2, %v906_v13, %v907_v14  ;;  %434 = vst.msk [vmem:[#allocation2 + $0x24] sm:$0xf] %vm408_vm6, %v418_v11  ;;  %v421_v14 = vld [vmem:[%s1887_s13 + $0x3c] sm:$0xf] }
  0x5f   : > { %437 = vst.msk [vmem:[#allocation2 + $0x30] sm:$0xf] %vm408_vm6, %v421_v14 }
  0x60   : > { %v787_v24 = vrot.slane %v786_v19, 4 }
  0x62   : > { %724 = vrot.lane.b32.xlu0 %v653_v26, %s1812_s30  ;;  %722 = vrot.lane.b32.xlu2 %v643_v34, %s1812_s30  ;;  %v996_v26 = vld [vmem:[%s2065_s10 + $0x8] sm:$0x1]  ;;  %v792_v28 = vsel %vm1913_vm5, %v787_v24, %v791_v25  ;;  %v419_v24 = vld [vmem:[%s1887_s13 + $0x30] sm:$0xf] }
  0x63   : > { %v420_v25 = vld [vmem:[%s1887_s13 + $0x34] sm:$0xf]  ;;  %435 = vst.msk [vmem:[#allocation2 + $0x28] sm:$0xf] %vm408_vm6, %v419_v24  ;;  %s1572_s13 = sshll.u32 %s1793_s18, 4 }
  0x64   : > { %942 = vrot.lane.b32.xlu1 %v898_v32, %s1811_s15  ;;  %v1005_v32 = vrot.slane %v996_v26, 5  ;;  %436 = vst.msk [vmem:[#allocation2 + $0x2c] sm:$0xf] %vm408_vm6, %v420_v25  ;;  %p398_p10 = scmp.lt.s32.totalorder %s1572_s13, 31 }
  0x66   : > { %v1006_v35 = vsel %vm1889_vm2, %v1004_v30, %v1005_v32  ;;  %s2353_s13 = smov (!%p398_p10, %s1572_s13), 31 }
  0x6a   : > { %950 = vrot.lane.b32.xlu0 %v912_v48, %s1811_s15  ;;  %944 = vrot.lane.b32.xlu2 %v901_v53, %s1811_s15  ;;  %v1637_v53 = vld [vmem:[%s2327_s3] sm:$0xf] }
  0x6b   : > { %v1638_v56 = vor.u32 %v1709_v54, %v1637_v53 }
  0x6c   : > { %952 = vrot.lane.b32.xlu1 %v915_v51, %s1811_s15  ;;  %v994_v51 = vld [vmem:[%s2065_s10] sm:$0xe] }
  0x6d   : > { %v1584_v52 = vrot.slane %v994_v51, 9  ;;  %v1175_v59 = vsel %vm1108_vm7, %v1638_v56, 0 }
  0x6e   : > { %1184 = vmatpush.bf16.msra.mxu1 %v1175_v59  ;;  %1722 = vmatpush.bf16.msrb.mxu3 %v1175_v59 }
  0x6f   : > { %v1003_v57 = vsel %vm1889_vm2, %v1584_v52, %v1002_v23 }
  0x72   : > { %720 = vrot.lane.b32.xlu0 %v629_v5, %s1812_s30  ;;  %718 = vrot.lane.b32.xlu2 %v619_v9, %s1812_s30 }
  0x74   : > { %946 = vrot.lane.b32.xlu1 %v905_v8, %s1811_s15 }
  0x7a   : > { %793 = vrot.lane.b32.xlu0 %v782_v22, %s1812_s30  ;;  %948 = vrot.lane.b32.xlu2 %v908_v27, %s1811_s15 }
  0x7c   : > { %795 = vrot.lane.b32.xlu1 %v792_v28, %s1812_s30  ;;  %v935_v34 = vpop.permute.xlu2 %934 }
  0x82   : > { %1009 = vrot.lane.b32.xlu0 %v1006_v35, %s1811_s15  ;;  %1007 = vrot.lane.b32.xlu2 %v1003_v57, %s1811_s15  ;;  %s1573_s15 = sshll.u32 %s2345_s19, 5 }
  0x83   : > { %s401_s29 = sadd.s32 %s1573_s15, %s2353_s13 }
  0x84   : > { %v937_v46 = vpop.permute.xlu2 %936  ;;  %s1574_s6 = sshll.u32 %s401_s29, 3 }
  0x85   : > { %s2250_s18 = scalar_lea.vmem %s2329_s5, %s1574_s6 }
  0x8c   : > { %v955_v48 = vpop.permute.xlu0 %954  ;;  %v705_v50 = vpop.permute.xlu2 %704 }
  0x8d   : > { %751 = vst.msk [vmem:[#allocation2 + $0xc] sm:$0xf] %vm483_vm8, %v705_v50 }
  0x8e   : > { %v957_v49 = vpop.permute.xlu1 %956 }
  0x94   : > { %v707_v58 = vpop.permute.xlu0 %706  ;;  %v478_v61 = vpop.permute.xlu2 %477 }
  0x95   : > { %752 = vst.msk [vmem:[#allocation2 + $0x10] sm:$0xf] %vm483_vm8, %v707_v58 }
  0x96   : > { %980 = vst.msk [vmem:[#allocation2 + $0x10] sm:$0xf] %vm823_vm9, %v935_v34  ;;  %v727_v60 = vpop.permute.xlu1 %726 }
  0x97   : > { %762 = vst.msk [vmem:[#allocation2 + $0x38] sm:$0xf] %vm483_vm8, %v727_v60 }
  0x98   : > { %990 = vst.msk [vmem:[#allocation2 + $0x38] sm:$0xf] %vm823_vm9, %v955_v48 }
  0x99   : > { %484 = vst.msk [vmem:[#allocation2] sm:$0xf] %vm483_vm8, %v478_v61 }
  0x9c   : > { %v709_v1 = vpop.permute.xlu0 %708  ;;  %v931_v3 = vpop.permute.xlu2 %930 }
  0x9d   : > { %753 = vst.msk [vmem:[#allocation2 + $0x14] sm:$0xf] %vm483_vm8, %v709_v1 }
  0x9e   : > { %981 = vst.msk [vmem:[#allocation2 + $0x14] sm:$0xf] %vm823_vm9, %v937_v46  ;;  %v729_v2 = vpop.permute.xlu1 %728  ;;  %v444_v46 = vld [vmem:[%s2065_s10 + $0x4] sm:$0xf] }
  0x9f   : > { %763 = vst.msk [vmem:[#allocation2 + $0x3c] sm:$0xf] %vm483_vm8, %v729_v2 }
  0xa0   : > { %991 = vst.msk [vmem:[#allocation2 + $0x3c] sm:$0xf] %vm823_vm9, %v957_v49 }
  0xa1   : > { %446 = vst.msk [vmem:[#allocation2 + $0x4c] sm:$0xf] %vm408_vm6, %v444_v46 }
  0xa4   : > { %v480_v5 = vpop.permute.xlu0 %479  ;;  %v713_v8 = vpop.permute.xlu2 %712 }
  0xa5   : > { %485 = vst.msk [vmem:[#allocation2 + $0x4] sm:$0xf] %vm483_vm8, %v480_v5  ;;  %v1712_v6 = vld [vmem:[#allocation2 + $0x10] sm:$0xff] }
  0xa6   : > { %v703_v7 = vpop.permute.xlu1 %702  ;;  %1685 = vmatmul.msk.bf16.vlgmr.msra.gmra.mxu2 %vm1083_vm10, %v1712_v6  ;;  %755 = vst.msk [vmem:[#allocation2 + $0x1c] sm:$0xf] %vm483_vm8, %v713_v8  ;;  %v1703_v30 = vld [vmem:[#allocation2 + $0x10] sm:$0xff] }
  0xa7   : > { %750 = vst.msk [vmem:[#allocation2 + $0x8] sm:$0xf] %vm483_vm8, %v703_v7  ;;  %v2168_v9 = vld [vmem:[#allocation2 + $0x38] sm:$0xff] }
  0xa8   : > { %978 = vst.msk [vmem:[#allocation2 + $0x8] sm:$0xf] %vm823_vm9, %v931_v3  ;;  %1629 = vmatmul.msk.bf16.vlgmr.msra.gmra.mxu3 %vm1083_vm10, %v2168_v9  ;;  %v1717_v57 = vld [vmem:[#allocation2 + $0x38] sm:$0xff] }
  0xa9   : > { %1723 = vmatpush.bf16.msra.mxu3 %v2126_v41  ;;  %v443_v41 = vld [vmem:[%s2065_s10] sm:$0xf] }
  0xaa   : > { %445 = vst.msk [vmem:[#allocation2 + $0x48] sm:$0xf] %vm408_vm6, %v443_v41 }
  0xac   : > { %v818_v10 = vpop.permute.xlu0 %817  ;;  %v939_v13 = vpop.permute.xlu2 %938 }
  0xad   : > { %824 = vst.msk [vmem:[#allocation2] sm:$0xf] %vm823_vm9, %v818_v10 }
  0xae   : > { %v820_v12 = vpop.permute.xlu1 %819 }
  0xaf   : > { %825 = vst.msk [vmem:[#allocation2 + $0x4] sm:$0xf] %vm823_vm9, %v820_v12 }
  0xb4   : > { %v933_v16 = vpop.permute.xlu0 %932  ;;  %v961_v19 = vpop.permute.xlu2 %960 }
  0xb5   : > { %979 = vst.msk [vmem:[#allocation2 + $0xc] sm:$0xf] %vm823_vm9, %v933_v16 }
  0xb6   : > { %v711_v17 = vpop.permute.xlu1 %710  ;;  %v1701_v18 = vld [vmem:[#allocation2] sm:$0xff] }
  0xb7   : > { %754 = vst.msk [vmem:[#allocation2 + $0x18] sm:$0xf] %vm483_vm8, %v711_v17  ;;  %1639 = vmatmul.msk.bf16.vlgmr.msra.gmra.mxu1 %vm1083_vm10, %v1701_v18 }
  0xb8   : > { %982 = vst.msk [vmem:[#allocation2 + $0x18] sm:$0xf] %vm823_vm9, %v939_v13 }
  0xbc   : > { %v731_v20 = vpop.permute.xlu0 %730  ;;  %v1702_v21 = vld [vmem:[#allocation2 + $0x8] sm:$0xff]  ;;  %v723_v23 = vpop.permute.xlu2 %722 }
  0xbd   : > { %764 = vst.msk [vmem:[#allocation2 + $0x40] sm:$0xf] %vm483_vm8, %v731_v20  ;;  %1623 = vmatmul.msk.bf16.vlgmr.msra.gmra.mxu0 %vm1083_vm10, %v1702_v21 }
  0xbe   : > { %v733_v22 = vpop.permute.xlu1 %732  ;;  %760 = vst.msk [vmem:[#allocation2 + $0x30] sm:$0xf] %vm483_vm8, %v723_v23 }
  0xbf   : > { %765 = vst.msk [vmem:[#allocation2 + $0x44] sm:$0xf] %vm483_vm8, %v733_v22 }
  0xc0   : > { %993 = vst.msk [vmem:[#allocation2 + $0x44] sm:$0xf] %vm823_vm9, %v961_v19 }
  0xc4   : > { %v941_v26 = vpop.permute.xlu0 %940  ;;  %v945_v28 = vpop.permute.xlu2 %944 }
  0xc5   : > { %983 = vst.msk [vmem:[#allocation2 + $0x1c] sm:$0xf] %vm823_vm9, %v941_v26 }
  0xc6   : > { %v959_v27 = vpop.permute.xlu1 %958 }
  0xc7   : > { %992 = vst.msk [vmem:[#allocation2 + $0x40] sm:$0xf] %vm823_vm9, %v959_v27  ;;  %1640 = vmatmul.msk.bf16.gmra.mxu1 %vm1083_vm10, %v1702_v21 }
  0xcc   : > { %v715_v29 = vpop.permute.xlu0 %714  ;;  %v1713_v32 = vld [vmem:[#allocation2 + $0x18] sm:$0xff]  ;;  %v719_v35 = vpop.permute.xlu2 %718 }
  0xcd   : > { %756 = vst.msk [vmem:[#allocation2 + $0x20] sm:$0xf] %vm483_vm8, %v715_v29  ;;  %1624 = vmatmul.msk.bf16.gmra.mxu0 %vm1083_vm10, %v1703_v30  ;;  %1686 = vmatmul.msk.bf16.gmra.mxu2 %vm1083_vm10, %v1713_v32  ;;  %v1704_v38 = vld [vmem:[#allocation2 + $0x18] sm:$0xff] }
  0xce   : > { %v717_v33 = vpop.permute.xlu1 %716  ;;  %v1710_v34 = vld [vmem:[#allocation2 + $0x40] sm:$0xff]  ;;  %758 = vst.msk [vmem:[#allocation2 + $0x28] sm:$0xf] %vm483_vm8, %v719_v35 }
  0xcf   : > { %757 = vst.msk [vmem:[#allocation2 + $0x24] sm:$0xf] %vm483_vm8, %v717_v33  ;;  %1630 = vmatmul.msk.bf16.gmra.mxu3 %vm1083_vm10, %v1710_v34  ;;  %v1718_v56 = vld [vmem:[#allocation2 + $0x40] sm:$0xff] }
  0xd0   : > { %985 = vst.msk [vmem:[#allocation2 + $0x24] sm:$0xf] %vm823_vm9, %v945_v28 }
  0xd4   : > { %v725_v31 = vpop.permute.xlu0 %724  ;;  %v949_v42 = vpop.permute.xlu2 %948 }
  0xd5   : > { %761 = vst.msk [vmem:[#allocation2 + $0x34] sm:$0xf] %vm483_vm8, %v725_v31 }
  0xd6   : > { %v943_v36 = vpop.permute.xlu1 %942 }
  0xd7   : > { %984 = vst.msk [vmem:[#allocation2 + $0x20] sm:$0xf] %vm823_vm9, %v943_v36  ;;  %1641 = vmatmul.msk.bf16.gmra.mxu1 %vm1083_vm10, %v1703_v30 }
  0xdc   : > { %v951_v37 = vpop.permute.xlu0 %950  ;;  %v1008_v51 = vpop.permute.xlu2 %1007 }
  0xdd   : > { %988 = vst.msk [vmem:[#allocation2 + $0x30] sm:$0xf] %vm823_vm9, %v951_v37  ;;  %1625 = vmatmul.msk.bf16.gmra.mxu0 %vm1083_vm10, %v1704_v38 }
  0xde   : > { %v953_v39 = vpop.permute.xlu1 %952  ;;  %v1714_v40 = vld [vmem:[#allocation2 + $0x20] sm:$0xff] }
  0xdf   : > { %989 = vst.msk [vmem:[#allocation2 + $0x34] sm:$0xf] %vm823_vm9, %v953_v39  ;;  %1687 = vmatmul.msk.bf16.gmra.mxu2 %vm1083_vm10, %v1714_v40  ;;  %v1705_v47 = vld [vmem:[#allocation2 + $0x20] sm:$0xff] }
  0xe4   : > { %v721_v43 = vpop.permute.xlu0 %720 }
  0xe5   : > { %759 = vst.msk [vmem:[#allocation2 + $0x2c] sm:$0xf] %vm483_vm8, %v721_v43 }
  0xe6   : > { %v947_v44 = vpop.permute.xlu1 %946  ;;  %987 = vst.msk [vmem:[#allocation2 + $0x2c] sm:$0xf] %vm823_vm9, %v949_v42  ;;  %v1707_v45 = vld [vmem:[#allocation2 + $0x30] sm:$0xff] }
  0xe7   : > { %986 = vst.msk [vmem:[#allocation2 + $0x28] sm:$0xf] %vm823_vm9, %v947_v44  ;;  %1642 = vmatmul.msk.bf16.gmra.mxu1 %vm1083_vm10, %v1704_v38  ;;  %1645 = vmatmul.msk.bf16.vlgmr.msrb.gmra.mxu3 %vm1083_vm10, %v1707_v45  ;;  %v1716_v54 = vld [vmem:[#allocation2 + $0x30] sm:$0xff] }
  0xec   : > { %v794_v48 = vpop.permute.xlu0 %793 }
  0xed   : > { %799 = vst.msk [vmem:[#allocation2 + $0x48] sm:$0xf] %vm483_vm8, %v794_v48  ;;  %1626 = vmatmul.msk.bf16.gmra.mxu0 %vm1083_vm10, %v1705_v47 }
  0xee   : > { %v1715_v49 = vld [vmem:[#allocation2 + $0x28] sm:$0xff]  ;;  %v796_v50 = vpop.permute.xlu1 %795  ;;  %1013 = vst.msk [vmem:[#allocation2 + $0x48] sm:$0xf] %vm823_vm9, %v1008_v51 }
  0xef   : > { %800 = vst.msk [vmem:[#allocation2 + $0x4c] sm:$0xf] %vm483_vm8, %v796_v50  ;;  %1688 = vmatmul.msk.bf16.gmra.mxu2 %vm1083_vm10, %v1715_v49  ;;  %v1706_v53 = vld [vmem:[#allocation2 + $0x28] sm:$0xff] }
  0xf4   : > { %v1010_v52 = vpop.permute.xlu0 %1009 }
  0xf5   : > { %1014 = vst.msk [vmem:[#allocation2 + $0x4c] sm:$0xf] %vm823_vm9, %v1010_v52 }
  0xf7   : > { %1643 = vmatmul.msk.bf16.gmra.mxu1 %vm1083_vm10, %v1705_v47  ;;  %1646 = vmatmul.msk.bf16.gmra.mxu3 %vm1083_vm10, %v2168_v9 }
  0xfc   : > { %v1719_v58 = vld [vmem:[#allocation2 + $0x48] sm:$0xff] }
  0xfd   : > { %1627 = vmatmul.msk.bf16.gmra.mxu0 %vm1083_vm10, %v1706_v53 }
  0xff   : > { %1689 = vmatmul.msk.bf16.gmra.mxu2 %vm1083_vm10, %v1716_v54 }
 0x107   : > { %1644 = vmatmul.msk.bf16.gmra.mxu1 %vm1083_vm10, %v1706_v53  ;;  %1691 = vmatmul.msk.bf16.vlgmr.msra.gmra.mxu3 %vm1083_vm10, %v1718_v56 }
 0x10d   : > { %1628 = vmatmul.msk.bf16.gmra.mxu0 %vm1083_vm10, %v1707_v45 }
 0x10f   : > { %1690 = vmatmul.msk.bf16.gmra.mxu2 %vm1083_vm10, %v1717_v57 }
 0x117   : > { %1692 = vmatmul.msk.bf16.gmra.mxu3 %vm1083_vm10, %v1719_v58 }
 0x129   : > { %v1326_v60 = vpop.f32.mrf.mxu2 }
 0x12b   : > { %v1151_v7 = vpop.f32.mrf.mxu3 }
 0x131   : > { %v1328_v5 = vpop.f32.mrf.mxu2 }
 0x133   : > { %v2258_v11 = vpop.f32.mrf.mxu3 }
 0x134   : > { %v1186_v59 = vpop.f32.mrf.mxu1 }
 0x13a   : > { %v1121_v61 = vpop.f32.mrf.mxu0 }
 0x13b   : > { %v1187_v62 = vadd.f32 %v1186_v59, %v1121_v61 }
 0x13c   : > { %v1188_v63 = vpop.f32.mrf.mxu1 }
 0x13d   : > { %v1366_v1 = vadd.f32 %v1326_v60, %v1187_v62 }
 0x13f   : > { %v1386_v2 = vadd.f32 %v2245_v0, %v1366_v1 }
 0x141   : > { %1403 = vst.msk [vmem:[%s2250_s18] sm:$0xff] %vm1402_vm11, %v1386_v2 }
 0x142   : > { %v1123_v3 = vpop.f32.mrf.mxu0 }
 0x143   : > { %v1189_v4 = vadd.f32 %v1188_v63, %v1123_v3 }
 0x144   : > { %v1191_v6 = vpop.f32.mrf.mxu1 }
 0x145   : > { %v1367_v8 = vadd.f32 %v1328_v5, %v1189_v4 }
 0x147   : > { %v1387_v9 = vadd.f32 %v2245_v0, %v1367_v8 }
 0x149   : > { %1404 = vst.msk [vmem:[%s2250_s18 + $0x8] sm:$0xff] %vm1402_vm11, %v1387_v9 }
 0x14a   : > { %v1126_v55 = vpop.f32.mrf.mxu0 }
 0x14b   : > { %v1192_v12 = vadd.f32 %v1191_v6, %v1126_v55 }
 0x14c   : > { %v1193_v10 = vpop.f32.mrf.mxu1 }
 0x150   : > { %v1331_v13 = vpop.f32.mrf.mxu2 }
 0x151   : > { %v1368_v14 = vadd.f32 %v1331_v13, %v1192_v12 }
 0x152   : > { %v1128_v15 = vpop.f32.mrf.mxu0  ;;  %v2263_v19 = vpop.f32.mrf.mxu3 }
 0x153   : > { %v1388_v16 = vadd.f32 %v2245_v0, %v1368_v14  ;;  %v1194_v18 = vadd.f32 %v1193_v10, %v1128_v15 }
 0x154   : > { %v1196_v17 = vpop.f32.mrf.mxu1 }
 0x155   : > { %1405 = vst.msk [vmem:[%s2250_s18 + $0x10] sm:$0xff] %vm1402_vm11, %v1388_v16 }
 0x158   : > { %v1333_v20 = vpop.f32.mrf.mxu2 }
 0x159   : > { %v1369_v21 = vadd.f32 %v1333_v20, %v1194_v18 }
 0x15a   : > { %v1131_v22 = vpop.f32.mrf.mxu0  ;;  %v2268_v26 = vpop.f32.mrf.mxu3 }
 0x15b   : > { %v1389_v23 = vadd.f32 %v2245_v0, %v1369_v21  ;;  %v1197_v25 = vadd.f32 %v1196_v17, %v1131_v22 }
 0x15c   : > { %v1198_v24 = vpop.f32.mrf.mxu1 }
 0x15d   : > { %1406 = vst.msk [vmem:[%s2250_s18 + $0x18] sm:$0xff] %vm1402_vm11, %v1389_v23 }
 0x162   : > { %v1133_v27 = vpop.f32.mrf.mxu0  ;;  %v1336_v28 = vpop.f32.mrf.mxu2 }
 0x163   : > { %v1370_v29 = vadd.f32 %v1336_v28, %v1197_v25  ;;  %v1199_v33 = vadd.f32 %v1198_v24, %v1133_v27 }
 0x164   : > { %v1201_v32 = vpop.f32.mrf.mxu1 }
 0x165   : > { %v1390_v30 = vadd.f32 %v2245_v0, %v1370_v29 }
 0x167   : > { %1407 = vst.msk [vmem:[%s2250_s18 + $0x20] sm:$0xff] %vm1402_vm11, %v1390_v30 }
 0x16a   : > { %v1136_v34 = vpop.f32.mrf.mxu0  ;;  %v1216_v35 = vpop.f32.mrf.mxu3 }
 0x16b   : > { %v1338_v31 = vpop.f32.mrf.mxu2  ;;  %v1202_v39 = vadd.f32 %v1201_v32, %v1136_v34  ;;  %v1217_v60 = vadd.f32 %v1216_v35, %v1151_v7 }
 0x16c   : > { %v1371_v36 = vadd.f32 %v1338_v31, %v1199_v33  ;;  %v1203_v38 = vpop.f32.mrf.mxu1 }
 0x16e   : > { %v1391_v37 = vadd.f32 %v2245_v0, %v1371_v36 }
 0x170   : > { %1408 = vst.msk [vmem:[%s2250_s18 + $0x28] sm:$0xff] %vm1402_vm11, %v1391_v37 }
 0x172   : > { %v1138_v40 = vpop.f32.mrf.mxu0  ;;  %v1218_v41 = vpop.f32.mrf.mxu3 }
 0x173   : > { %v1341_v42 = vpop.f32.mrf.mxu2  ;;  %v1204_v45 = vadd.f32 %v1203_v38, %v1138_v40  ;;  %v1219_v8 = vadd.f32 %v1218_v41, %v2258_v11 }
 0x174   : > { %v1372_v43 = vadd.f32 %v1341_v42, %v1202_v39  ;;  %v1206_v48 = vpop.f32.mrf.mxu1 }
 0x176   : > { %v1392_v44 = vadd.f32 %v2245_v0, %v1372_v43 }
 0x178   : > { %1409 = vst.msk [vmem:[%s2250_s18 + $0x30] sm:$0xff] %vm1402_vm11, %v1392_v44 }
 0x17a   : > { %v1141_v46 = vpop.f32.mrf.mxu0  ;;  %v1221_v47 = vpop.f32.mrf.mxu3 }
 0x17b   : > { %v1343_v49 = vpop.f32.mrf.mxu2  ;;  %v1207_v52 = vadd.f32 %v1206_v48, %v1141_v46  ;;  %v1222_v16 = vadd.f32 %v1221_v47, %v2263_v19 }
 0x17c   : > { %v1373_v50 = vadd.f32 %v1343_v49, %v1204_v45  ;;  %v1208_v58 = vpop.f32.mrf.mxu1 }
 0x17e   : > { %v1393_v51 = vadd.f32 %v2245_v0, %v1373_v50 }
 0x180   : > { %1410 = vst.msk [vmem:[%s2250_s18 + $0x38] sm:$0xff] %vm1402_vm11, %v1393_v51 }
 0x182   : > { %v1223_v53 = vpop.f32.mrf.mxu3  ;;  %v1143_v54 = vpop.f32.mrf.mxu0 }
 0x183   : > { %v1346_v56 = vpop.f32.mrf.mxu2  ;;  %v1209_v61 = vadd.f32 %v1208_v58, %v1143_v54  ;;  %v1224_v25 = vadd.f32 %v1223_v53, %v2268_v26 }
 0x184   : > { %v1374_v57 = vadd.f32 %v1346_v56, %v1207_v52  ;;  %v1211_v6 = vpop.f32.mrf.mxu1 }
 0x186   : > { %v1394_v59 = vadd.f32 %v2245_v0, %v1374_v57 }
 0x188   : > { %1411 = vst.msk [vmem:[%s2250_s18 + $0x40] sm:$0xff] %vm1402_vm11, %v1394_v59 }
 0x18a   : > { %v1356_v62 = vpop.f32.mrf.mxu3  ;;  %v1146_v3 = vpop.f32.mrf.mxu0 }
 0x18b   : > { %v1348_v63 = vpop.f32.mrf.mxu2  ;;  %v1378_v1 = vadd.f32 %v1356_v62, %v1217_v60  ;;  %v1212_v7 = vadd.f32 %v1211_v6, %v1146_v3 }
 0x18c   : > { %v1375_v2 = vadd.f32 %v1348_v63, %v1209_v61  ;;  %v1213_v11 = vpop.f32.mrf.mxu1 }
 0x18d   : > { %v1398_v4 = vadd.f32 %v2245_v0, %v1378_v1 }
 0x18e   : > { %v1395_v5 = vadd.f32 %v2245_v0, %v1375_v2 }
 0x18f   : > { %1415 = vst.msk [vmem:[%s2250_s18 + $0x60] sm:$0xff] %vm1402_vm11, %v1398_v4 }
 0x190   : > { %1412 = vst.msk [vmem:[%s2250_s18 + $0x48] sm:$0xff] %vm1402_vm11, %v1395_v5 }
 0x192   : > { %v1358_v9 = vpop.f32.mrf.mxu3  ;;  %v1148_v15 = vpop.f32.mrf.mxu0 }
 0x193   : > { %v1351_v55 = vpop.f32.mrf.mxu2  ;;  %v1379_v10 = vadd.f32 %v1358_v9, %v1219_v8  ;;  %v1214_v17 = vadd.f32 %v1213_v11, %v1148_v15 }
 0x194   : > { %v1376_v12 = vadd.f32 %v1351_v55, %v1212_v7 }
 0x195   : > { %v1399_v13 = vadd.f32 %v2245_v0, %v1379_v10 }
 0x196   : > { %v1396_v14 = vadd.f32 %v2245_v0, %v1376_v12 }
 0x197   : > { %1416 = vst.msk [vmem:[%s2250_s18 + $0x68] sm:$0xff] %vm1402_vm11, %v1399_v13 }
 0x198   : > { %1413 = vst.msk [vmem:[%s2250_s18 + $0x50] sm:$0xff] %vm1402_vm11, %v1396_v14 }
 0x19a   : > { %v1361_v18 = vpop.f32.mrf.mxu3 }
 0x19b   : > { %v1353_v20 = vpop.f32.mrf.mxu2  ;;  %v1380_v21 = vadd.f32 %v1361_v18, %v1222_v16 }
 0x19c   : > { %v1377_v22 = vadd.f32 %v1353_v20, %v1214_v17 }
 0x19d   : > { %v1400_v23 = vadd.f32 %v2245_v0, %v1380_v21 }
 0x19e   : > { %v1397_v24 = vadd.f32 %v2245_v0, %v1377_v22 }
 0x19f   : > { %1417 = vst.msk [vmem:[%s2250_s18 + $0x70] sm:$0xff] %vm1402_vm11, %v1400_v23 }
 0x1a0   : > { %1414 = vst.msk [vmem:[%s2250_s18 + $0x58] sm:$0xff] %vm1402_vm11, %v1397_v24 }
 0x1a2   : > { %v1363_v27 = vpop.f32.mrf.mxu3 }
 0x1a3   : > { %v1381_v28 = vadd.f32 %v1363_v27, %v1224_v25 }
 0x1a5   : > { %v1401_v19 = vadd.f32 %v2245_v0, %v1381_v28 }
 0x1a7   : > { %1418 = vst.msk [vmem:[%s2250_s18 + $0x78] sm:$0xff] %vm1402_vm11, %v1401_v19 }
 0x1a8 PF: > { %s15_s22 = sadd.s32 1, %s1809_s22   ;;  %s2334_s18 = smov %s1801_s20 }
 0x1a9   : > { %p12_p11 = scmp.ge.s32.totalorder %s15_s22, 6   ;;  %s2335_s19 = smov %s1805_s21 }
 0x1aa   : > { %s2336_s20 = smov %s2339_s23  ;;  %s2337_s21 = smov %s2343_s24 }
 0x1ab   :  { %14 = sbr.rel (!%p12_p11) target bundleno = 3 (0x3), region = 78 }

</bundles_post_ra>
